<compile_context>
chip_gen: v7x
topology: tpu7x:2x2x1
jax: 0.10.0
libtpu: 0.0.40
codegen_flags: <defaults>
</compile_context>

<pallas_src>
import functools

import jax
import jax.numpy as jnp
from jax import lax
from jax.experimental import pallas as pl
from jax.experimental.pallas import tpu as pltpu


def _cdiv(a, b):
    return -(-a // b)


def _round_up(x, m):
    return ((x + m - 1) // m) * m


def _device_kind():
    try:
        return jax.devices()[0].device_kind.lower()
    except Exception:
        return ""


def _lm_criterion_kernel(logits_ref, target_ref, mask_ref, out_ref, acc_ref,
                         *, block_rows, v_tile, n_rows, tiles_per_core):
    c = pl.program_id(0)   # core-split axis ("parallel": sharded across TCs)
    i = pl.program_id(1)   # row-tile axis within a core ("arbitrary")
    j = pl.program_id(2)   # vocab-tile axis ("arbitrary")

    # Reset the per-core per-row accumulator at the start of this core's
    # segment of the grid.
    @pl.when((i == 0) & (j == 0))
    def _():
        acc_ref[...] = jnp.zeros_like(acc_ref)

    tile_id = c * tiles_per_core + i                      # UN-clamped tile id
    logits = logits_ref[...]                              # native dtype, no upcast
    tgt = target_ref[...]                                 # (block_rows, 1) int32
    msk = mask_ref[...]                                   # (block_rows, 1) f32

    # Row validity covers (a) the ragged last row tile and (b) duplicated
    # tiles a tail core re-reads because the logits block index is clamped in
    # the index_map. Garbage (OOB) logits are selected to 0 BEFORE any use.
    row_ids = tile_id * block_rows + lax.broadcasted_iota(
        jnp.int32, (block_rows, 1), 0)
    row_valid = row_ids < n_rows                          # (block_rows, 1)

    # One-hot select of logits[row, target[row]] restricted to this vocab
    # tile. Lanes past V (padded block) can never match a valid target.
    lane = lax.broadcasted_iota(jnp.int32, (block_rows, v_tile), 1)
    local_tgt = tgt - j * v_tile                          # (block_rows, 1)
    sel = (lane == local_tgt) & row_valid                 # (block_rows, v_tile)
    zero = jnp.zeros((), dtype=logits.dtype)
    contrib = jnp.where(sel, logits, zero)                # native dtype

    # Fold the v_tile/128 lane groups with plain vreg adds (at most one
    # nonzero per row -> exact in any dtype), then cast the narrow partial
    # once to f32. Only this (block_rows, 128) slab touches the accumulator.
    groups = v_tile // 128
    folded = contrib[:, 0:128]
    for g in range(1, groups):
        folded = folded + contrib[:, g * 128:(g + 1) * 128]
    folded = folded.astype(jnp.float32)                   # (block_rows, 128)

    # Mask multiply on the narrow per-row partial only (not the whole tile).
    acc_ref[...] += folded * msk

    # Per-core epilogue: reduce the accumulator once and emit the partial
    # numerator broadcast over an (8, 128)-aligned output block.
    @pl.when((i == pl.num_programs(1) - 1) & (j == pl.num_programs(2) - 1))
    def _():
        partial = jnp.sum(acc_ref[...])
        out_ref[...] = jnp.full((8, 128), partial, dtype=jnp.float32)


@functools.partial(jax.jit,
                   static_argnames=("block_rows", "vocab_tile", "core_split"))
def language_model_criterion(logits, target, mask, *,
                             block_rows=None, vocab_tile=2048, core_split=None):
    """Pallas implementation of LanguageModelCriterion.forward."""
    B, T, V = logits.shape
    n = B * T
    itemsize = jnp.dtype(logits.dtype).itemsize          # bf16 streams at 2 B

    kind = _device_kind()
    is_v7 = ("v7" in kind) or ("7x" in kind)              # 2 TCs, 64 MiB VMEM

    # ---- Vocab (lane) tile: lane-aligned, footprint independent of V. ------
    vt = max(128, (int(vocab_tile) // 128) * 128)
    v_tile = min(_round_up(V, 128), vt)                   # always mult. of 128
    num_v_tiles = _cdiv(V, v_tile)

    # ---- Row (sublane) tile: ~8 MiB tiles (~6 MiB on v7x), multiple of 8. --
    if block_rows is None:
        target_tile_bytes = (6 if is_v7 else 8) * 1024 * 1024
        block_rows = max(8, target_tile_bytes // (v_tile * itemsize))
    block_rows = max(8, (int(block_rows) // 8) * 8)
    block_rows = min(block_rows, _round_up(n, 8))

    num_row_tiles = _cdiv(n, block_rows)                  # R
    # Core split: only spend tile duplication where a 2nd TensorCore exists.
    if core_split is None:
        core_split = 2 if is_v7 else 1
    core_split = max(1, min(int(core_split), num_row_tiles))
    tiles_per_core = _cdiv(num_row_tiles, core_split)     # Rc
    padded_rows = core_split * tiles_per_core * block_rows

    # ---- Inputs: no pad copy of the big logits array. -----------------------
    logits2d = logits.reshape(n, V)
    target2d = target.reshape(n, 1).astype(jnp.int32)
    mask2d = mask.reshape(n, 1).astype(jnp.float32)
    den = jnp.sum(mask2d)                                 # tiny; done in XLA

    if padded_rows != n:
        pad = padded_rows - n
        target2d = jnp.pad(target2d, ((0, pad), (0, 0)))  # tiny (n,1) arrays
        mask2d = jnp.pad(mask2d, ((0, pad), (0, 0)))

    R = num_row_tiles
    Rc = tiles_per_core

    # Clamp so the logits DMA never starts past the real rows; duplicated
    # tiles are neutralized by the in-kernel row-validity mask (which uses the
    # UN-clamped tile id).
    logits_idx = lambda c, i, j: (jnp.minimum(c * Rc + i, R - 1), j)

    steps_per_core = Rc * num_v_tiles
    use_deep_pipeline = (steps_per_core >= 4) and hasattr(pl, "Buffered")
    if use_deep_pipeline:
        try:
            logits_spec = pl.BlockSpec((block_rows, v_tile), logits_idx,
                                       pipeline_mode=pl.Buffered(3))
        except TypeError:
            use_deep_pipeline = False
            logits_spec = pl.BlockSpec((block_rows, v_tile), logits_idx)
    else:
        logits_spec = pl.BlockSpec((block_rows, v_tile), logits_idx)

    target_spec = pl.BlockSpec((block_rows, 1), lambda c, i, j: (c * Rc + i, 0))
    mask_spec = pl.BlockSpec((block_rows, 1), lambda c, i, j: (c * Rc + i, 0))
    out_spec = pl.BlockSpec((8, 128), lambda c, i, j: (c, 0))

    kernel = functools.partial(
        _lm_criterion_kernel,
        block_rows=block_rows, v_tile=v_tile, n_rows=n, tiles_per_core=Rc)

    # VMEM budget: (2 or 3)-buffered logits tile + per-row f32 accumulator +
    # lane-padded target/mask buffers + output blocks, plus headroom. Kept
    # under 40 MiB so it is safe on v7x's 64 MiB physical VMEM.
    n_buf = 3 if use_deep_pipeline else 2
    tile_bytes = block_rows * v_tile * itemsize
    acc_bytes = block_rows * 128 * 4
    small_bytes = 2 * 2 * block_rows * 128 * 4            # target+mask, padded
    out_bytes = 2 * 8 * 128 * 4
    needed = n_buf * tile_bytes + acc_bytes + small_bytes + out_bytes
    vmem_limit = int(min(max(needed + (4 << 20), 24 << 20), 40 << 20))

    partials = pl.pallas_call(
        kernel,
        out_shape=jax.ShapeDtypeStruct((core_split * 8, 128), jnp.float32),
        grid_spec=pltpu.PrefetchScalarGridSpec(
            num_scalar_prefetch=0,
            grid=(core_split, Rc, num_v_tiles),
            in_specs=[logits_spec, target_spec, mask_spec],
            out_specs=out_spec,
            scratch_shapes=[pltpu.VMEM((block_rows, 128), jnp.float32)],
        ),
        compiler_params=pltpu.CompilerParams(
            dimension_semantics=("parallel", "arbitrary", "arbitrary"),
            vmem_limit_bytes=vmem_limit),
    )(logits2d, target2d, mask2d)

    # Each core's partial numerator is broadcast over its own (8, 128) block;
    # take one representative element per block and combine.
    num = jnp.sum(partials.reshape(core_split, 8 * 128)[:, 0])
    # Matches PyTorch exactly, including NaN when sum(mask) == 0.
    return -num / den


def _reference(logits, target, mask):
    """Pure-JAX reference mirroring the PyTorch forward."""
    B, T, V = logits.shape
    l = logits.reshape(-1, V)
    t = target.reshape(-1)
    m = mask.reshape(-1).astype(jnp.float32)
    picked = jnp.take_along_axis(l, t[:, None], axis=1)[:, 0]
    return jnp.sum(-picked * m) / jnp.sum(m)


if __name__ == "__main__":
    key = jax.random.PRNGKey(0)
    k1, k2, k3 = jax.random.split(key, 3)

    B, T, V = 2, 8, 128  # small shapes: batch=2, seq=8, vocab=128

    raw = jax.random.normal(k1, (B, T, V), dtype=jnp.float32)
    logits = jax.nn.log_softmax(raw, axis=-1)
    target = jax.random.randint(k2, (B, T), 0, V, dtype=jnp.int32)
    mask = (jax.random.uniform(k3, (B, T)) > 0.25).astype(jnp.float32)

    out = language_model_criterion(logits, target, mask)
    out = jax.block_until_ready(out)

    ref = _reference(logits, target, mask)
    assert jnp.allclose(out, ref, rtol=1e-5, atol=1e-5), (out, ref)

    print("KERNEL_OK")
</pallas_src>

<mosaic_0001>
module attributes {stable_mosaic.version = 11 : i64} {
  func.func @_lm_criterion_kernel(%arg0: i32, %arg1: i32, %arg2: i32, %arg3: memref<16x128xf32, #tpu.memory_space<vmem>>, %arg4: memref<16x1xi32, #tpu.memory_space<vmem>>, %arg5: memref<16x1xf32, #tpu.memory_space<vmem>>, %arg6: memref<8x128xf32, #tpu.memory_space<vmem>>, %arg7: memref<16x128xf32, #tpu.memory_space<vmem>>) attributes {dimension_semantics = [#tpu.dimension_semantics<parallel>, #tpu.dimension_semantics<arbitrary>, #tpu.dimension_semantics<arbitrary>], iteration_bounds = array<i64: 1, 1, 1>, scalar_prefetch = 0 : i64, scratch_operands = 1 : i64, tpu.core_type = #tpu.core_type<tc>, window_params = [{transform_indices = @transform_0, window_bounds = array<i64: 16, 128>}, {transform_indices = @transform_1, window_bounds = array<i64: 16, 1>}, {transform_indices = @transform_2, window_bounds = array<i64: 16, 1>}, {transform_indices = @transform_3, window_bounds = array<i64: 8, 128>}]} {
    %c0_i32 = arith.constant 0 : i32
    %0 = arith.cmpi eq, %arg1, %c0_i32 : i32
    %c0_i32_0 = arith.constant 0 : i32
    %1 = arith.cmpi eq, %arg2, %c0_i32_0 : i32
    %2 = arith.andi %0, %1 : i1
    %3 = arith.extui %2 : i1 to i32
    %c0_i32_1 = arith.constant 0 : i32
    %4 = arith.cmpi ne, %3, %c0_i32_1 : i32
    scf.if %4 {
      %cst_15 = arith.constant 0.000000e+00 : f32
      %36 = vector.broadcast %cst_15 : f32 to vector<16x128xf32>
      %c0_16 = arith.constant 0 : index
      %c0_17 = arith.constant 0 : index
      %37 = vector.load %arg7[%c0_16, %c0_17] : memref<16x128xf32, #tpu.memory_space<vmem>>, vector<16x128xf32>
      tpu.vector_store %arg7[%c0_16, %c0_17], %36 {strides = array<i32>} : memref<16x128xf32, #tpu.memory_space<vmem>>, vector<16x128xf32>,
    } else {
    }
    %c1_i32 = arith.constant 1 : i32
    %5 = arith.muli %arg0, %c1_i32 : i32
    %6 = arith.addi %5, %arg1 : i32
    %c0 = arith.constant 0 : index
    %c0_2 = arith.constant 0 : index
    %7 = vector.load %arg3[%c0, %c0_2] : memref<16x128xf32, #tpu.memory_space<vmem>>, vector<16x128xf32>
    %c0_3 = arith.constant 0 : index
    %c0_4 = arith.constant 0 : index
    %8 = vector.load %arg4[%c0_3, %c0_4] : memref<16x1xi32, #tpu.memory_space<vmem>>, vector<16x1xi32>
    %c0_5 = arith.constant 0 : index
    %c0_6 = arith.constant 0 : index
    %9 = vector.load %arg5[%c0_5, %c0_6] : memref<16x1xf32, #tpu.memory_space<vmem>>, vector<16x1xf32>
    %c16_i32 = arith.constant 16 : i32
    %10 = arith.muli %6, %c16_i32 : i32
    %11 = tpu.iota {dimensions = array<i32: 0>} : vector<16x1xi32>
    %12 = vector.broadcast %10 : i32 to vector<16x1xi32>
    %13 = arith.addi %12, %11 : vector<16x1xi32>
    %c16_i32_7 = arith.constant 16 : i32
    %14 = vector.broadcast %c16_i32_7 : i32 to vector<16x1xi32>
    %15 = arith.cmpi slt, %13, %14 : vector<16x1xi32>
    %16 = tpu.iota {dimensions = array<i32: 1>} : vector<16x128xi32>
    %c128_i32 = arith.constant 128 : i32
    %17 = arith.muli %arg2, %c128_i32 : i32
    %18 = vector.broadcast %17 : i32 to vector<16x1xi32>
    %19 = arith.subi %8, %18 : vector<16x1xi32>
    %20 = vector.broadcast %19 : vector<16x1xi32> to vector<16x128xi32>
    %21 = arith.cmpi eq, %16, %20 : vector<16x128xi32>
    %22 = vector.broadcast %15 : vector<16x1xi1> to vector<16x128xi1>
    %23 = arith.andi %21, %22 : vector<16x128xi1>
    %cst = arith.constant 0.000000e+00 : f32
    %24 = vector.broadcast %cst : f32 to vector<16x128xf32>
    %25 = arith.select %23, %7, %24 : vector<16x128xi1>, vector<16x128xf32>
    %c0_8 = arith.constant 0 : index
    %c0_9 = arith.constant 0 : index
    %26 = vector.load %arg7[%c0_8, %c0_9] : memref<16x128xf32, #tpu.memory_space<vmem>>, vector<16x128xf32>
    %27 = vector.broadcast %9 : vector<16x1xf32> to vector<16x128xf32>
    %28 = arith.mulf %25, %27 : vector<16x128xf32>
    %29 = arith.addf %26, %28 : vector<16x128xf32>
    %c0_10 = arith.constant 0 : index
    %c0_11 = arith.constant 0 : index
    %30 = vector.load %arg7[%c0_10, %c0_11] : memref<16x128xf32, #tpu.memory_space<vmem>>, vector<16x128xf32>
    tpu.vector_store %arg7[%c0_10, %c0_11], %29 {strides = array<i32>} : memref<16x128xf32, #tpu.memory_space<vmem>>, vector<16x128xf32>,
    %c0_i32_12 = arith.constant 0 : i32
    %31 = arith.cmpi eq, %arg1, %c0_i32_12 : i32
    %c0_i32_13 = arith.constant 0 : i32
    %32 = arith.cmpi eq, %arg2, %c0_i32_13 : i32
    %33 = arith.andi %31, %32 : i1
    %34 = arith.extui %33 : i1 to i32
    %c0_i32_14 = arith.constant 0 : i32
    %35 = arith.cmpi ne, %34, %c0_i32_14 : i32
    scf.if %35 {
      %c0_15 = arith.constant 0 : index
      %c0_16 = arith.constant 0 : index
      %36 = vector.load %arg7[%c0_15, %c0_16] : memref<16x128xf32, #tpu.memory_space<vmem>>, vector<16x128xf32>
      %37 = vector.shape_cast %36 : vector<16x128xf32> to vector<1x16x128xf32>
      %cst_17 = arith.constant dense<0.000000e+00> : vector<1xf32>
      %38 = vector.multi_reduction <add>, %37, %cst_17 [1, 2] : vector<1x16x128xf32> to vector<1xf32>
      %39 = vector.shape_cast %38 : vector<1xf32> to vector<1x1x1xf32>
      %40 = vector.extract %39[0, 0, 0] : f32 from vector<1x1x1xf32>
      %41 = vector.broadcast %40 : f32 to vector<8x128xf32>
      %c0_18 = arith.constant 0 : index
      %c0_19 = arith.constant 0 : index
      %42 = vector.load %arg6[%c0_18, %c0_19] : memref<8x128xf32, #tpu.memory_space<vmem>>, vector<8x128xf32>
      tpu.vector_store %arg6[%c0_18, %c0_19], %41 {strides = array<i32>} : memref<8x128xf32, #tpu.memory_space<vmem>>, vector<8x128xf32>,
    } else {
    }
    return
  }
  func.func @transform_0(%arg0: i32, %arg1: i32, %arg2: i32) -> (i32, i32) {
    %c1_i32 = arith.constant 1 : i32
    %0 = arith.muli %arg0, %c1_i32 : i32
    %1 = arith.addi %0, %arg1 : i32
    %c0_i32 = arith.constant 0 : i32
    %2 = arith.minsi %1, %c0_i32 : i32
    %c0_i32_0 = arith.constant 0 : i32
    return %2, %arg2 : i32, i32
  }
  func.func @transform_1(%arg0: i32, %arg1: i32, %arg2: i32) -> (i32, i32) {
    %c1_i32 = arith.constant 1 : i32
    %0 = arith.muli %arg0, %c1_i32 : i32
    %1 = arith.addi %0, %arg1 : i32
    %c0_i32 = arith.constant 0 : i32
    %c0_i32_0 = arith.constant 0 : i32
    return %1, %c0_i32 : i32, i32
  }
  func.func @transform_2(%arg0: i32, %arg1: i32, %arg2: i32) -> (i32, i32) {
    %c1_i32 = arith.constant 1 : i32
    %0 = arith.muli %arg0, %c1_i32 : i32
    %1 = arith.addi %0, %arg1 : i32
    %c0_i32 = arith.constant 0 : i32
    %c0_i32_0 = arith.constant 0 : i32
    return %1, %c0_i32 : i32, i32
  }
  func.func @transform_3(%arg0: i32, %arg1: i32, %arg2: i32) -> (i32, i32) {
    %c0_i32 = arith.constant 0 : i32
    %c0_i32_0 = arith.constant 0 : i32
    return %arg0, %c0_i32 : i32, i32
  }
}

</mosaic_0001>

<bundles_post_ra>
// kernel: language_model_criterion.1
= control target key start
LH: loop header
LB: loop body
LE: loop exit
PB: predicated region body
PF: predicated region fallthrough
CT: control target
= control target key end

     0   :  { %v197_v0 = vmov 0   ;;  %v114_v5 = vlaneseq  ;;  %s239_s2 = inlined_call_operand.vmem [shape: f32[16,1], index: 2, kind: input, shape index: {}]   ;;  %s240_s1 = inlined_call_operand.vmem [shape: s32[16,1], index: 1, kind: input, shape index: {}]   ;;  %s241_s0 = inlined_call_operand.vmem [shape: f32[16,128], index: 0, kind: input, shape index: {}]   ;;  %s242_s3 = inlined_call_operand.vmem [shape: f32[8,128], index: 3, kind: output, shape index: {}]  }
   0x1   :  { %196 = vset.pattern.permute.xlu1 %v197_v0  ;;  %195 = vset.pattern.permute.xlu0 %v197_v0  ;;  %v103_v1 = vld [vmem:[%s239_s2] sm:$0xff]  ;;  %v104_v3 = vld [vmem:[%s239_s2 + $0x8] sm:$0xff] }
   0x2   :  { %v101_v2 = vld [vmem:[%s240_s1] sm:$0xff]  ;;  %140 = vperm.xlu1 %196, %v103_v1   ;;  %v102_v4 = vld [vmem:[%s240_s1 + $0x8] sm:$0xff]  ;;  %v115_v6 = vand.u32 127, %v114_v5 }
   0x3   :  { %121 = vperm.xlu0 %195, %v101_v2   ;;  %v99_v9 = vld [vmem:[%s241_s0] sm:$0xff]  ;;  %v100_v10 = vld [vmem:[%s241_s0 + $0x8] sm:$0xff] }
   0x6   :  { %145 = vperm.xlu1 %196, %v104_v3  }
   0x7   :  { %124 = vperm.xlu0 %195, %v102_v4  }
  0x81   :  { %v141_v7 = vpop.permute.xlu1 %140 }
  0x82   :  { %v122_v8 = vpop.permute.xlu0 %121 }
  0x83   :  { %vm126_vm0 = vcmp.eq.s32.totalorder %v115_v6, %v122_v8 }
  0x84   :  { %v134_v11 = vsel %vm126_vm0, %v99_v9, 0.0 }
  0x85   :  { %v146_v13 = vpop.permute.xlu1 %145  ;;  %v148_v15 = vmul.f32 %v141_v7, %v134_v11 }
  0x86   :  { %v125_v12 = vpop.permute.xlu0 %124 }
  0x87   :  { %vm127_vm1 = vcmp.eq.s32.totalorder %v115_v6, %v125_v12 }
  0x88   :  { %v135_v14 = vsel %vm127_vm1, %v100_v10, 0.0 }
  0x89   :  { %v149_v16 = vmul.f32 %v146_v13, %v135_v14 }
  0x8b   :  { %v158_v17 = vadd.f32 %v149_v16, %v148_v15 }
  0x8d   :  { %159 = vadd.xlane.f32.xlu0 %v158_v17 }
 0x11a   :  { %v160_v18 = vpop.xlane.xlu0 %159 }
 0x11b   :  { %v161_v19 = vrot.slane %v160_v18, 4 }
 0x11d   :  { %v162_v20 = vadd.f32 %v161_v19, %v160_v18 }
 0x11f   :  { %v163_v21 = vrot.slane %v162_v20, 2 }
 0x121   :  { %v164_v22 = vadd.f32 %v163_v21, %v162_v20 }
 0x123   :  { %v165_v23 = vrot.slane %v164_v22, 1 }
 0x125   :  { %v166_v24 = vadd.f32 %v165_v23, %v164_v22 }
 0x127   :  { %192 = vpush %v166_v24 }
 0x158   :  { %s193_s1 = spop %192 }
 0x159   :  { %v168_v25 = vstv %s193_s1 }
 0x15a   :  { %169 = vst [vmem:[%s242_s3] sm:$0xff] %v168_v25 }

</bundles_post_ra>
